<compile_context>
chip_gen: v6e
topology: v6e:2x2x1
jax: 0.10.0
libtpu: 0.0.40
codegen_flags: <defaults>
</compile_context>

<pallas_src>
import functools

import jax
import jax.numpy as jnp
from jax.experimental import pallas as pl
from jax.experimental.pallas import tpu as pltpu


# ---------------------------------------------------------------------------
# Row shift (ky taps): result[i, :] = a[i - delta, :] along the sublane axis.
# Rows that wrap across the image boundary are masked by the caller, so only
# the interior shift direction matters.  The roll convention is probed once
# on-device; if sublane roll is unavailable we fall back to an unambiguous
# concatenate-based shift.
# ---------------------------------------------------------------------------
@functools.lru_cache(maxsize=None)
def _row_roll_mode():
    def probe(x_ref, o_ref):
        o_ref[...] = pltpu.roll(x_ref[...], 1, 0)

    x = jnp.arange(16 * 256, dtype=jnp.float32).reshape(16, 256)
    try:
        y = pl.pallas_call(
            probe, out_shape=jax.ShapeDtypeStruct((16, 256), jnp.float32))(x)
        y = jax.block_until_ready(y)
    except Exception:
        return "concat"
    if bool(jnp.array_equal(y, jnp.roll(x, 1, axis=0))):
        return "roll"        # pltpu.roll matches jnp.roll semantics
    if bool(jnp.array_equal(y, jnp.roll(x, -1, axis=0))):
        return "roll_neg"    # opposite sign convention
    return "concat"


def _shift_rows(a, delta, mode):
    """result[i, :] = a[i - delta, :]; boundary rows are masked by the caller."""
    m = a.shape[0]
    if m == 1:
        return a
    if mode == "concat":
        if delta > 0:
            return jnp.concatenate([a[m - 1:], a[:m - 1]], axis=0)
        return jnp.concatenate([a[1:], a[:1]], axis=0)
    shift = delta % m if mode == "roll" else (-delta) % m
    return pltpu.roll(a, shift, 0)


# ---------------------------------------------------------------------------
# Kernel body
# ---------------------------------------------------------------------------
def _make_kernel(has_far: bool, compute_dtype, roll_mode: str):
    f32 = jnp.float32

    def kernel(*refs):
        if has_far:
            far_ref, near_ref, w1_ref, b1_ref, w2_ref, b2_ref, out_ref = refs
        else:
            near_ref, w1_ref, b1_ref, w2_ref, b2_ref, out_ref = refs

        bb, H, wci = near_ref.shape          # (batch_block, H, W*Cin)
        wcm = w1_ref.shape[2]                # W*Cmid
        wco = w2_ref.shape[2]                # W*Cout
        M = bb * H

        # all_in = far + near  (lane-dense (bb, H, W*Cin)), flatten rows for MXU
        x = near_ref[...]
        if has_far:
            x = x + far_ref[...]
        xm = x.reshape(M, wci).astype(compute_dtype)

        # Row index inside each image -> masks for the zero-padded rows above
        # (y == 0) and below (y == H-1).  Built full-width so the where() is a
        # plain lane-dense VPU select.
        y_idx = jax.lax.broadcasted_iota(jnp.int32, (bb, H, wcm), 1).reshape(M, wcm)
        zeros = jnp.zeros((M, wcm), f32)

        def shift(a, d):
            return _shift_rows(a, d, roll_mode)

        # ---- conv1: 3 banded MXU matmuls over ky; ky shift on the 64-wide result
        y0 = jnp.dot(xm, w1_ref[0], preferred_element_type=f32)   # tap ky=0
        y1 = jnp.dot(xm, w1_ref[1], preferred_element_type=f32)   # tap ky=1
        y2 = jnp.dot(xm, w1_ref[2], preferred_element_type=f32)   # tap ky=2
        y0 = jnp.where(y_idx > 0, shift(y0, 1), zeros)       # needs row y-1
        y2 = jnp.where(y_idx < H - 1, shift(y2, -1), zeros)  # needs row y+1
        mid = jnp.maximum(y0 + y1 + y2 + b1_ref[...], 0.0)   # (M, W*Cmid) f32

        # ---- conv2: ky shift on the (narrow) input side, 3 banded matmuls
        x_up = jnp.where(y_idx > 0, shift(mid, 1), zeros)        # row y-1
        x_dn = jnp.where(y_idx < H - 1, shift(mid, -1), zeros)   # row y+1
        z = (jnp.dot(mid.astype(compute_dtype), w2_ref[1],
                     preferred_element_type=f32)
             + jnp.dot(x_up.astype(compute_dtype), w2_ref[0],
                       preferred_element_type=f32)
             + jnp.dot(x_dn.astype(compute_dtype), w2_ref[2],
                       preferred_element_type=f32)
             + b2_ref[...])

        # One unmasked, lane-dense store in the packed output layout.
        out_ref[...] = z.reshape(bb, H, wco).astype(out_ref.dtype)

    return kernel


# ---------------------------------------------------------------------------
# Host-side parameter preparation
# ---------------------------------------------------------------------------
def _band_weights(w_hwio, width):
    """(3, 3, Ci, Co) HWIO weights -> (3, width*Ci, width*Co).

    Per ky, block (wi, wo) equals w[ky, wi - wo + 1] when |wi - wo| <= 1 and
    zero otherwise, so the 'same' zero padding along W is built into the band.
    """
    mats = []
    for ky in range(3):
        m = jnp.zeros((width * w_hwio.shape[2], width * w_hwio.shape[3]),
                      w_hwio.dtype)
        for kx in range(3):
            sel = jnp.eye(width, width, k=1 - kx, dtype=w_hwio.dtype)
            m = m + jnp.kron(sel, w_hwio[ky, kx])
        mats.append(m)
    return jnp.stack(mats)


def _padded_bytes(rows, lanes, itemsize):
    # (8, 128) tile padding of the two minor dims.
    return (-(-rows // 8) * 8) * (-(-lanes // 128) * 128) * itemsize


def reresnet_block(far_in, near_in, w1, b1, w2, b2, *,
                   batch_block=None, compute_dtype=jnp.float32):
    """ReResNetBlock forward.

    far_in : (N, H, W, C) float32 or None
    near_in: (N, H, W, C) float32
    w1: (3, 3, C, Cmid)   b1: (Cmid,)
    w2: (3, 3, Cmid, C)   b2: (C,)
    Returns (near_out, far_out) in NHWC.  compute_dtype=jnp.bfloat16 selects
    bf16 MXU operands (f32 accumulation, f32 bias/ReLU either way).
    """
    N, H, W, Cin = near_in.shape
    Cmid, Cout = w1.shape[3], w2.shape[3]
    assert w1.shape == (3, 3, Cin, Cmid) and w2.shape == (3, 3, Cmid, Cout)
    assert b1.shape == (Cmid,) and b2.shape == (Cout,)
    has_far = far_in is not None

    # Lane-packed activations: NHWC -> (N, H, W*C) is a free reshape.
    near_p = near_in.reshape(N, H, W * Cin)
    args_far = [far_in.reshape(N, H, W * Cin)] if has_far else []

    # Block-banded weights and W-tiled biases.
    # TODO(synk): for very large W the (W*Ci, W*Co) band grows as W^2; switch
    # to per-tap accumulated matmuls (or add a W-tile grid axis) in that regime.
    w1b = _band_weights(w1, W).astype(compute_dtype)   # (3, W*Cin,  W*Cmid)
    w2b = _band_weights(w2, W).astype(compute_dtype)   # (3, W*Cmid, W*Cout)
    b1r = jnp.tile(b1.astype(jnp.float32), W).reshape(1, W * Cmid)
    b2r = jnp.tile(b2.astype(jnp.float32), W).reshape(1, W * Cout)

    # ---- generation-aware VMEM budgeting ((8,128)-padding aware) -----------
    try:
        vmem_cap = int(pltpu.get_tpu_info().vmem_capacity_bytes)
    except Exception:
        vmem_cap = 64 * 1024 * 1024            # conservative: v7x per-core VMEM

    witem = jnp.dtype(compute_dtype).itemsize
    act_bytes = _padded_bytes(H, W * Cin, 4)
    out_bytes = _padded_bytes(H, W * Cout, 4)
    per_image = 2 * ((2 if has_far else 1) * act_bytes + out_bytes)   # x2 dbuf
    weight_bytes = 2 * (3 * _padded_bytes(W * Cin, W * Cmid, witem)
                        + 3 * _padded_bytes(W * Cmid, W * Cout, witem)
                        + _padded_bytes(1, W * Cmid, 4)
                        + _padded_bytes(1, W * Cout, 4))

    if batch_block is None:
        budget = max(per_image, int(vmem_cap * 0.45) - weight_bytes)
        batch_block = max(1, min(N, budget // per_image))
        if N >= 2:     # keep >= 2 grid steps so both v7x TensorCores get work
            batch_block = min(batch_block, max(1, N // 2))
        while N % batch_block:
            batch_block -= 1
    assert N % batch_block == 0 and batch_block >= 1
    grid = (N // batch_block,)

    vmem_limit = int(min(vmem_cap,
                         max(32 * 1024 * 1024,
                             batch_block * per_image + weight_bytes + (4 << 20))))

    # TODO(synk): add an H-tile grid axis (1-row halo) for images whose
    # per-image blocks alone exceed the VMEM budget.

    act_spec = pl.BlockSpec((batch_block, H, W * Cin), lambda b: (b, 0, 0))
    in_specs = ([act_spec] if has_far else []) + [
        act_spec,
        pl.BlockSpec(w1b.shape, lambda b: (0, 0, 0)),
        pl.BlockSpec(b1r.shape, lambda b: (0, 0)),
        pl.BlockSpec(w2b.shape, lambda b: (0, 0, 0)),
        pl.BlockSpec(b2r.shape, lambda b: (0, 0)),
    ]

    out_packed = pl.pallas_call(
        _make_kernel(has_far, compute_dtype, _row_roll_mode()),
        out_shape=jax.ShapeDtypeStruct((N, H, W * Cout), jnp.float32),
        grid_spec=pltpu.PrefetchScalarGridSpec(
            num_scalar_prefetch=0,
            grid=grid,
            in_specs=in_specs,
            out_specs=pl.BlockSpec((batch_block, H, W * Cout),
                                   lambda b: (b, 0, 0)),
        ),
        compiler_params=pltpu.CompilerParams(
            dimension_semantics=("parallel",),
            vmem_limit_bytes=vmem_limit),
    )(*(args_far + [near_p, w1b, b1r, w2b, b2r]))

    far_out = out_packed.reshape(N, H, W, Cout)   # free relabel back to NHWC
    near_out = near_in                            # identity path, no compute
    return near_out, far_out


# ---------------------------------------------------------------------------
# Reference and self-test
# ---------------------------------------------------------------------------
def _conv_ref(x, w, b):
    y = jax.lax.conv_general_dilated(
        x, w, window_strides=(1, 1), padding="SAME",
        dimension_numbers=("NHWC", "HWIO", "NHWC"),
        precision=jax.lax.Precision.HIGHEST)
    return y + b.reshape(1, 1, 1, -1)


if __name__ == "__main__":
    key = jax.random.PRNGKey(0)
    N, H, W = 2, 16, 16
    n_feats, reduction = 16, 4
    Cmid = n_feats // reduction

    k1, k2, k3, k4, k5, k6 = jax.random.split(key, 6)
    far_in = jax.random.normal(k1, (N, H, W, n_feats), jnp.float32)
    near_in = jax.random.normal(k2, (N, H, W, n_feats), jnp.float32)
    w1 = jax.random.normal(k3, (3, 3, n_feats, Cmid), jnp.float32) * 0.1
    b1 = jax.random.normal(k4, (Cmid,), jnp.float32) * 0.1
    w2 = jax.random.normal(k5, (3, 3, Cmid, n_feats), jnp.float32) * 0.1
    b2 = jax.random.normal(k6, (n_feats,), jnp.float32) * 0.1

    # far + near path (f32 MXU operands: tight check)
    near_out, far_out = reresnet_block(far_in, near_in, w1, b1, w2, b2)
    jax.block_until_ready(far_out)
    all_in = far_in + near_in
    far_ref = _conv_ref(jnp.maximum(_conv_ref(all_in, w1, b1), 0.0), w2, b2)
    assert bool(jnp.all(near_out == near_in))
    err = float(jnp.max(jnp.abs(far_out - far_ref)))
    assert err < 2e-3, f"f32 far+near mismatch: {err}"

    # far_in = None path (kernel variant without the far input)
    near_out2, far_out2 = reresnet_block(None, near_in, w1, b1, w2, b2)
    jax.block_until_ready(far_out2)
    far_ref2 = _conv_ref(jnp.maximum(_conv_ref(near_in, w1, b1), 0.0), w2, b2)
    assert bool(jnp.all(near_out2 == near_in))
    err2 = float(jnp.max(jnp.abs(far_out2 - far_ref2)))
    assert err2 < 2e-3, f"f32 near-only mismatch: {err2}"

    # bf16 MXU operands (v6e/v7x fast path); f32 accumulation, loose check.
    _, far_out_bf = reresnet_block(far_in, near_in, w1, b1, w2, b2,
                                   compute_dtype=jnp.bfloat16)
    jax.block_until_ready(far_out_bf)
    err3 = float(jnp.max(jnp.abs(far_out_bf - far_ref)))
    assert err3 < 1e-1, f"bf16 mismatch: {err3}"

    print("KERNEL_OK")
</pallas_src>

<mosaic_0001>
module attributes {stable_mosaic.version = 11 : i64} {
  func.func @probe(%arg0: memref<16x256xf32, #tpu.memory_space<vmem>>, %arg1: memref<16x256xf32, #tpu.memory_space<vmem>>) attributes {dimension_semantics = [], scalar_prefetch = 0 : i64, scratch_operands = 0 : i64, tpu.core_type = #tpu.core_type<tc>} {
    %c0 = arith.constant 0 : index
    %c0_0 = arith.constant 0 : index
    %0 = vector.load %arg0[%c0, %c0_0] : memref<16x256xf32, #tpu.memory_space<vmem>>, vector<16x256xf32>
    %c1_i32 = arith.constant 1 : i32
    %1 = tpu.dynamic_rotate %0 by %c1_i32 dim 0 : vector<16x256xf32>, i32 -> vector<16x256xf32>
    %c0_1 = arith.constant 0 : index
    %c0_2 = arith.constant 0 : index
    %2 = vector.load %arg1[%c0_1, %c0_2] : memref<16x256xf32, #tpu.memory_space<vmem>>, vector<16x256xf32>
    tpu.vector_store %arg1[%c0_1, %c0_2], %1 {strides = array<i32>} : memref<16x256xf32, #tpu.memory_space<vmem>>, vector<16x256xf32>,
    return
  }
}

module attributes {stable_mosaic.version = 11 : i64} {
  func.func @kernel(%arg0: i32, %arg1: memref<1x16x256xf32, #tpu.memory_space<vmem>>, %arg2: memref<1x16x256xf32, #tpu.memory_space<vmem>>, %arg3: memref<3x256x64xf32, #tpu.memory_space<vmem>>, %arg4: memref<1x64xf32, #tpu.memory_space<vmem>>, %arg5: memref<3x64x256xf32, #tpu.memory_space<vmem>>, %arg6: memref<1x256xf32, #tpu.memory_space<vmem>>, %arg7: memref<1x16x256xf32, #tpu.memory_space<vmem>>) attributes {dimension_semantics = [#tpu.dimension_semantics<parallel>], iteration_bounds = array<i64: 2>, scalar_prefetch = 0 : i64, scratch_operands = 0 : i64, tpu.core_type = #tpu.core_type<tc>, window_params = [{transform_indices = @transform_0, window_bounds = array<i64: 1, 16, 256>}, {transform_indices = @transform_1, window_bounds = array<i64: 1, 16, 256>}, {pipeline_mode = #tpu.pipeline_mode<synchronous>, transform_indices = @transform_2, window_bounds = array<i64: 3, 256, 64>}, {pipeline_mode = #tpu.pipeline_mode<synchronous>, transform_indices = @transform_3, window_bounds = array<i64: 1, 64>}, {pipeline_mode = #tpu.pipeline_mode<synchronous>, transform_indices = @transform_4, window_bounds = array<i64: 3, 64, 256>}, {pipeline_mode = #tpu.pipeline_mode<synchronous>, transform_indices = @transform_5, window_bounds = array<i64: 1, 256>}, {transform_indices = @transform_6, window_bounds = array<i64: 1, 16, 256>}]} {
    %c0 = arith.constant 0 : index
    %c0_0 = arith.constant 0 : index
    %c0_1 = arith.constant 0 : index
    %0 = vector.load %arg2[%c0, %c0_0, %c0_1] : memref<1x16x256xf32, #tpu.memory_space<vmem>>, vector<1x16x256xf32>
    %c0_2 = arith.constant 0 : index
    %c0_3 = arith.constant 0 : index
    %c0_4 = arith.constant 0 : index
    %1 = vector.load %arg1[%c0_2, %c0_3, %c0_4] : memref<1x16x256xf32, #tpu.memory_space<vmem>>, vector<1x16x256xf32>
    %2 = arith.addf %0, %1 : vector<1x16x256xf32>
    %3 = vector.shape_cast %2 : vector<1x16x256xf32> to vector<16x256xf32>
    %4 = tpu.iota {dimensions = array<i32: 1>} : vector<1x16x64xi32>
    %5 = vector.shape_cast %4 : vector<1x16x64xi32> to vector<16x64xi32>
    %cst = arith.constant 0.000000e+00 : f32
    %6 = vector.broadcast %cst : f32 to vector<16x64xf32>
    %c0_5 = arith.constant 0 : index
    %c0_6 = arith.constant 0 : index
    %c0_7 = arith.constant 0 : index
    %7 = vector.load %arg3[%c0_5, %c0_6, %c0_7] : memref<3x256x64xf32, #tpu.memory_space<vmem>>, vector<1x256x64xf32>
    %8 = vector.shape_cast %7 : vector<1x256x64xf32> to vector<256x64xf32>
    %cst_8 = arith.constant dense<0.000000e+00> : vector<16x64xf32>
    %9 = tpu.matmul %3, %8, %cst_8 {dimension_numbers = #tpu.dot_dimension_numbers<[1], [0], [0], [1], [0, 0, 1, 1], [], []>} : vector<16x256xf32>, vector<256x64xf32>, vector<16x64xf32> -> vector<16x64xf32>
    %c1 = arith.constant 1 : index
    %c0_9 = arith.constant 0 : index
    %c0_10 = arith.constant 0 : index
    %10 = vector.load %arg3[%c1, %c0_9, %c0_10] : memref<3x256x64xf32, #tpu.memory_space<vmem>>, vector<1x256x64xf32>
    %11 = vector.shape_cast %10 : vector<1x256x64xf32> to vector<256x64xf32>
    %cst_11 = arith.constant dense<0.000000e+00> : vector<16x64xf32>
    %12 = tpu.matmul %3, %11, %cst_11 {dimension_numbers = #tpu.dot_dimension_numbers<[1], [0], [0], [1], [0, 0, 1, 1], [], []>} : vector<16x256xf32>, vector<256x64xf32>, vector<16x64xf32> -> vector<16x64xf32>
    %c2 = arith.constant 2 : index
    %c0_12 = arith.constant 0 : index
    %c0_13 = arith.constant 0 : index
    %13 = vector.load %arg3[%c2, %c0_12, %c0_13] : memref<3x256x64xf32, #tpu.memory_space<vmem>>, vector<1x256x64xf32>
    %14 = vector.shape_cast %13 : vector<1x256x64xf32> to vector<256x64xf32>
    %cst_14 = arith.constant dense<0.000000e+00> : vector<16x64xf32>
    %15 = tpu.matmul %3, %14, %cst_14 {dimension_numbers = #tpu.dot_dimension_numbers<[1], [0], [0], [1], [0, 0, 1, 1], [], []>} : vector<16x256xf32>, vector<256x64xf32>, vector<16x64xf32> -> vector<16x64xf32>
    %c0_i32 = arith.constant 0 : i32
    %16 = vector.broadcast %c0_i32 : i32 to vector<16x64xi32>
    %17 = arith.cmpi sgt, %5, %16 : vector<16x64xi32>
    %18 = vector.extract_strided_slice %9 {offsets = [15, 0], sizes = [1, 64], strides = [1, 1]} : vector<16x64xf32> to vector<1x64xf32>
    %19 = vector.extract_strided_slice %9 {offsets = [0, 0], sizes = [15, 64], strides = [1, 1]} : vector<16x64xf32> to vector<15x64xf32>
    %20 = tpu.concatenate %18, %19 in 0 : vector<1x64xf32>, vector<15x64xf32> -> vector<16x64xf32>
    %21 = arith.select %17, %20, %6 : vector<16x64xi1>, vector<16x64xf32>
    %c15_i32 = arith.constant 15 : i32
    %22 = vector.broadcast %c15_i32 : i32 to vector<16x64xi32>
    %23 = arith.cmpi slt, %5, %22 : vector<16x64xi32>
    %24 = vector.extract_strided_slice %15 {offsets = [1, 0], sizes = [15, 64], strides = [1, 1]} : vector<16x64xf32> to vector<15x64xf32>
    %25 = vector.extract_strided_slice %15 {offsets = [0, 0], sizes = [1, 64], strides = [1, 1]} : vector<16x64xf32> to vector<1x64xf32>
    %26 = tpu.concatenate %24, %25 in 0 : vector<15x64xf32>, vector<1x64xf32> -> vector<16x64xf32>
    %27 = arith.select %23, %26, %6 : vector<16x64xi1>, vector<16x64xf32>
    %28 = arith.addf %21, %12 : vector<16x64xf32>
    %29 = arith.addf %28, %27 : vector<16x64xf32>
    %c0_15 = arith.constant 0 : index
    %c0_16 = arith.constant 0 : index
    %30 = vector.load %arg4[%c0_15, %c0_16] : memref<1x64xf32, #tpu.memory_space<vmem>>, vector<1x64xf32>
    %31 = vector.broadcast %30 : vector<1x64xf32> to vector<16x64xf32>
    %32 = arith.addf %29, %31 : vector<16x64xf32>
    %cst_17 = arith.constant 0.000000e+00 : f32
    %33 = vector.broadcast %cst_17 : f32 to vector<16x64xf32>
    %34 = arith.maximumf %32, %33 : vector<16x64xf32>
    %c0_i32_18 = arith.constant 0 : i32
    %35 = vector.broadcast %c0_i32_18 : i32 to vector<16x64xi32>
    %36 = arith.cmpi sgt, %5, %35 : vector<16x64xi32>
    %37 = vector.extract_strided_slice %34 {offsets = [15, 0], sizes = [1, 64], strides = [1, 1]} : vector<16x64xf32> to vector<1x64xf32>
    %38 = vector.extract_strided_slice %34 {offsets = [0, 0], sizes = [15, 64], strides = [1, 1]} : vector<16x64xf32> to vector<15x64xf32>
    %39 = tpu.concatenate %37, %38 in 0 : vector<1x64xf32>, vector<15x64xf32> -> vector<16x64xf32>
    %40 = arith.select %36, %39, %6 : vector<16x64xi1>, vector<16x64xf32>
    %c15_i32_19 = arith.constant 15 : i32
    %41 = vector.broadcast %c15_i32_19 : i32 to vector<16x64xi32>
    %42 = arith.cmpi slt, %5, %41 : vector<16x64xi32>
    %43 = vector.extract_strided_slice %34 {offsets = [1, 0], sizes = [15, 64], strides = [1, 1]} : vector<16x64xf32> to vector<15x64xf32>
    %44 = vector.extract_strided_slice %34 {offsets = [0, 0], sizes = [1, 64], strides = [1, 1]} : vector<16x64xf32> to vector<1x64xf32>
    %45 = tpu.concatenate %43, %44 in 0 : vector<15x64xf32>, vector<1x64xf32> -> vector<16x64xf32>
    %46 = arith.select %42, %45, %6 : vector<16x64xi1>, vector<16x64xf32>
    %c1_20 = arith.constant 1 : index
    %c0_21 = arith.constant 0 : index
    %c0_22 = arith.constant 0 : index
    %47 = vector.load %arg5[%c1_20, %c0_21, %c0_22] : memref<3x64x256xf32, #tpu.memory_space<vmem>>, vector<1x64x256xf32>
    %48 = vector.shape_cast %47 : vector<1x64x256xf32> to vector<64x256xf32>
    %cst_23 = arith.constant dense<0.000000e+00> : vector<16x256xf32>
    %49 = tpu.matmul %34, %48, %cst_23 {dimension_numbers = #tpu.dot_dimension_numbers<[1], [0], [0], [1], [0, 0, 1, 1], [], []>} : vector<16x64xf32>, vector<64x256xf32>, vector<16x256xf32> -> vector<16x256xf32>
    %c0_24 = arith.constant 0 : index
    %c0_25 = arith.constant 0 : index
    %c0_26 = arith.constant 0 : index
    %50 = vector.load %arg5[%c0_24, %c0_25, %c0_26] : memref<3x64x256xf32, #tpu.memory_space<vmem>>, vector<1x64x256xf32>
    %51 = vector.shape_cast %50 : vector<1x64x256xf32> to vector<64x256xf32>
    %cst_27 = arith.constant dense<0.000000e+00> : vector<16x256xf32>
    %52 = tpu.matmul %40, %51, %cst_27 {dimension_numbers = #tpu.dot_dimension_numbers<[1], [0], [0], [1], [0, 0, 1, 1], [], []>} : vector<16x64xf32>, vector<64x256xf32>, vector<16x256xf32> -> vector<16x256xf32>
    %53 = arith.addf %49, %52 : vector<16x256xf32>
    %c2_28 = arith.constant 2 : index
    %c0_29 = arith.constant 0 : index
    %c0_30 = arith.constant 0 : index
    %54 = vector.load %arg5[%c2_28, %c0_29, %c0_30] : memref<3x64x256xf32, #tpu.memory_space<vmem>>, vector<1x64x256xf32>
    %55 = vector.shape_cast %54 : vector<1x64x256xf32> to vector<64x256xf32>
    %cst_31 = arith.constant dense<0.000000e+00> : vector<16x256xf32>
    %56 = tpu.matmul %46, %55, %cst_31 {dimension_numbers = #tpu.dot_dimension_numbers<[1], [0], [0], [1], [0, 0, 1, 1], [], []>} : vector<16x64xf32>, vector<64x256xf32>, vector<16x256xf32> -> vector<16x256xf32>
    %57 = arith.addf %53, %56 : vector<16x256xf32>
    %c0_32 = arith.constant 0 : index
    %c0_33 = arith.constant 0 : index
    %58 = vector.load %arg6[%c0_32, %c0_33] : memref<1x256xf32, #tpu.memory_space<vmem>>, vector<1x256xf32>
    %59 = vector.broadcast %58 : vector<1x256xf32> to vector<16x256xf32>
    %60 = arith.addf %57, %59 : vector<16x256xf32>
    %61 = vector.shape_cast %60 : vector<16x256xf32> to vector<1x16x256xf32>
    %c0_34 = arith.constant 0 : index
    %c0_35 = arith.constant 0 : index
    %c0_36 = arith.constant 0 : index
    %62 = vector.load %arg7[%c0_34, %c0_35, %c0_36] : memref<1x16x256xf32, #tpu.memory_space<vmem>>, vector<1x16x256xf32>
    tpu.vector_store %arg7[%c0_34, %c0_35, %c0_36], %61 {strides = array<i32>} : memref<1x16x256xf32, #tpu.memory_space<vmem>>, vector<1x16x256xf32>,
    return
  }
  func.func @transform_0(%arg0: i32) -> (i32, i32, i32) {
    %c0_i32 = arith.constant 0 : i32
    %c0_i32_0 = arith.constant 0 : i32
    %c0_i32_1 = arith.constant 0 : i32
    return %arg0, %c0_i32, %c0_i32_0 : i32, i32, i32
  }
  func.func @transform_1(%arg0: i32) -> (i32, i32, i32) {
    %c0_i32 = arith.constant 0 : i32
    %c0_i32_0 = arith.constant 0 : i32
    %c0_i32_1 = arith.constant 0 : i32
    return %arg0, %c0_i32, %c0_i32_0 : i32, i32, i32
  }
  func.func @transform_2(%arg0: i32) -> (i32, i32, i32) {
    %c0_i32 = arith.constant 0 : i32
    %c0_i32_0 = arith.constant 0 : i32
    %c0_i32_1 = arith.constant 0 : i32
    %c0_i32_2 = arith.constant 0 : i32
    return %c0_i32, %c0_i32_0, %c0_i32_1 : i32, i32, i32
  }
  func.func @transform_3(%arg0: i32) -> (i32, i32) {
    %c0_i32 = arith.constant 0 : i32
    %c0_i32_0 = arith.constant 0 : i32
    %c0_i32_1 = arith.constant 0 : i32
    return %c0_i32, %c0_i32_0 : i32, i32
  }
  func.func @transform_4(%arg0: i32) -> (i32, i32, i32) {
    %c0_i32 = arith.constant 0 : i32
    %c0_i32_0 = arith.constant 0 : i32
    %c0_i32_1 = arith.constant 0 : i32
    %c0_i32_2 = arith.constant 0 : i32
    return %c0_i32, %c0_i32_0, %c0_i32_1 : i32, i32, i32
  }
  func.func @transform_5(%arg0: i32) -> (i32, i32) {
    %c0_i32 = arith.constant 0 : i32
    %c0_i32_0 = arith.constant 0 : i32
    %c0_i32_1 = arith.constant 0 : i32
    return %c0_i32, %c0_i32_0 : i32, i32
  }
  func.func @transform_6(%arg0: i32) -> (i32, i32, i32) {
    %c0_i32 = arith.constant 0 : i32
    %c0_i32_0 = arith.constant 0 : i32
    %c0_i32_1 = arith.constant 0 : i32
    return %arg0, %c0_i32, %c0_i32_0 : i32, i32, i32
  }
}

</mosaic_0001>

<bundles_post_ra>
// kernel: tpu_custom_call.1
= control target key start
LH: loop header
LB: loop body
LE: loop exit
PB: predicated region body
PF: predicated region fallthrough
CT: control target
= control target key end

     0   :  { %6 = vsyncpa [#allocation3], 0  ;;  %s133_s0 = inlined_call_operand.hbm [shape: f32[16,256], index: 0, kind: input, shape index: {}]   ;;  %s134_s1 = inlined_call_operand.hbm [shape: f32[16,256], index: 1, kind: output, shape index: {}]  }
   0x1   :  { %7 = vsyncpa [#allocation4], 0  ;;  %s107_s6 = smov [#allocation2]  }
   0x2   :  { %s13_s7 = sshll.u32 %s107_s6, 4  ;;  %s14_s7 = int_to_ptr.vmem [resolvable:$true] %s13_s7 }
   0x3   :  { %s71_s8 = scalar_lea.vmem %s14_s7, 512  ;;  %p76_p1 = scmp.lt.s32.totalorder %s14_s7, %s14_s7 }
   0x4   :  { %p72_p0 = scmp.ne.s32.totalorder %s14_s7, %s71_s8  ;;  %p77_p2 = scmp.lt.s32.totalorder %s71_s8, %s71_s8 }
   0x6   :  { %p78_p3 = por %p77_p2, %p76_p1 }
   0x8   :  { %p79_p4 = pnand %p78_p3, %p72_p0 }
   0xa   :  { %82 = shalt.err (!%p79_p4)
}
   0xb   :  { %s108_s9 = smov 256   ;;  %s109_s10 = smov 16  }
   0xc   :  { %19 = dma.hbm_to_vmem [thread:$0]  %s133_s0, 512, %s14_s7, [#allocation3], %s108_s9, %s108_s9, %s109_s10  }
   0xd   :  { %103 = dma.done.wait [#allocation3], 512  }
   0xe   :  { %104 = vsyncadd [#allocation3], 4294966784  ;;  %v31_v0 = vlaneseq  ;;  %v23_v2 = vld [vmem:[#allocation2] sm:$0xff]  ;;  %v25_v3 = vld [vmem:[#allocation2 + $0x10] sm:$0xff]  ;;  %s110_s13 = smov [#allocation5]  }
   0xf   :  { %v24_v4 = vld [vmem:[#allocation2 + $0x8] sm:$0xff]  ;;  %s47_s14 = sshll.u32 %s110_s13, 4  ;;  %v27_v5 = vrot.slane %v23_v2, 7  ;;  %v29_v6 = vrot.slane %v25_v3, 7  ;;  %v26_v7 = vld [vmem:[#allocation2 + $0x18] sm:$0xff]  ;;  %s48_s14 = int_to_ptr.vmem [resolvable:$true] %s47_s14 }
  0x10   :  { %v32_v1 = vshrl.u32 %v31_v0, 7  ;;  %v28_v8 = vrot.slane %v24_v4, 7  ;;  %v30_v9 = vrot.slane %v26_v7, 7  ;;  %s83_s0 = scalar_lea.vmem %s48_s14, 512  ;;  %p88_p6 = scmp.lt.s32.totalorder %s48_s14, %s48_s14 }
  0x11   :  { %p84_p5 = scmp.ne.s32.totalorder %s48_s14, %s83_s0  ;;  %p89_p7 = scmp.lt.s32.totalorder %s83_s0, %s83_s0 }
  0x12   :  { %vm33_vm0 = vcmp.lt.s32.totalorder %v32_v1, 1 }
  0x13   :  { %v36_v10 = vsel %vm33_vm0, %v29_v6, %v27_v5  ;;  %v34_v11 = vsel %vm33_vm0, %v27_v5, %v29_v6  ;;  %v37_v12 = vsel %vm33_vm0, %v30_v9, %v28_v8  ;;  %v35_v13 = vsel %vm33_vm0, %v28_v8, %v30_v9  ;;  %p90_p8 = por %p89_p7, %p88_p6 }
  0x14   :  { %38 = vst [vmem:[#allocation5] sm:$0xff] %v36_v10  ;;  %40 = vst [vmem:[#allocation5 + $0x10] sm:$0xff] %v34_v11 }
  0x15   :  { %39 = vst [vmem:[#allocation5 + $0x8] sm:$0xff] %v37_v12  ;;  %41 = vst [vmem:[#allocation5 + $0x18] sm:$0xff] %v35_v13  ;;  %p91_p9 = pnand %p90_p8, %p84_p5 }
  0x17   :  { %94 = shalt.err (!%p91_p9)
}
  0x18   :  { %53 = dma.vmem_to_hbm [thread:$0]  %s48_s14, 512, %s134_s1, [#allocation4], %s108_s9, %s108_s9, %s109_s10  }
  0x19   :  { %105 = dma.done.wait [#allocation4], 512  }
  0x1a   :  { %106 = vsyncadd [#allocation4], 4294966784 }
  0x1b   :  { %57 = vsyncpa [#allocation3], 1 }
  0x1c   :  { %58 = vsyncpa [#allocation4], 1 }

// kernel: tpu_custom_call.1
= control target key start
LH: loop header
LB: loop body
LE: loop exit
PB: predicated region body
PF: predicated region fallthrough
CT: control target
= control target key end

     0   :  { %11 = vsyncpa [#allocation3], 0  ;;  %s2164_s0 = inlined_call_operand.vmem [shape: f32[2,16,256], index: 0, kind: input, shape index: {}]   ;;  %s2165_s1 = inlined_call_operand.vmem [shape: f32[2,16,256], index: 1, kind: input, shape index: {}]   ;;  %s2166_s2 = inlined_call_operand.vmem [shape: f32[3,256,64], index: 2, kind: input, shape index: {}]   ;;  %s2167_s3 = inlined_call_operand.vmem [shape: f32[1,64], index: 3, kind: input, shape index: {}]   ;;  %s2168_s4 = inlined_call_operand.vmem [shape: f32[3,64,256], index: 4, kind: input, shape index: {}]   ;;  %s2169_s5 = inlined_call_operand.vmem [shape: f32[1,256], index: 5, kind: input, shape index: {}]   ;;  %s2170_s6 = inlined_call_operand.hbm [shape: f32[2,16,256], index: 6, kind: output, shape index: {}]  }
   0x1   :  { %13 = vsyncpa [#allocation3 + $0x1], 0  ;;  %s1474_s21 = smov 0   ;;  %s1476_s22 = smov 0  }
   0x2   :  { %s1478_s23 = smov 0   ;;  %s1480_s24 = smov 0  }
   0x3 LB: > { %s1495_s25 = sadd.s32 4294967295, %s1433_s24   ;;  %s1081_s26 = sadd.s32 4294967294, %s1433_s24   ;;  %s1433_s24 = sphi %s1480_s24, %s2176_s24   ;;  %s1429_s23 = sphi %s1478_s23, %s2175_s23   ;;  %s1425_s22 = sphi %s1476_s22, %s2174_s22   ;;  %s1421_s21 = sphi %s1474_s21, %s2173_s21  }
   0x4   : > { %s1499_s27 = sadd.s32 1, %s1433_s24   ;;  %s162_s28 = sadd.s32 1, %s1429_s23 }
   0x5   : > { %s159_s29 = ssub.s32 %s1433_s24, %s1499_s27  ;;  %p172_p0 = scmp.ne.s32.totalorder %s1429_s23, %s1425_s22 }
   0x6   : > { %p160_p1 = scmp.eq.s32.totalorder %s159_s29, 0  ;;  %p173_p2 = scmp.eq.s32.totalorder %s1495_s25, 1 }
   0x7   : > { %p178_p3 = scmp.ne.s32.totalorder %s1425_s22, %s1421_s21  ;;  %p179_p4 = scmp.eq.s32.totalorder %s1081_s26, 1 }
   0x8   : > { %s1510_s30 = scalar_select %p160_p1, %s1429_s23, %s162_s28  }
   0x9   : > { %p1512_p5 = por %p173_p2, %p172_p0  ;;  %p1516_p6 = por %p179_p4, %p178_p3 }
   0xa   : > { %p1084_p7 = scmp.ge.s32.totalorder %s1433_s24, 1  ;;  %p225_p8 = scmp.lt.s32.totalorder %s1433_s24, 3 }
   0xc   : > { %p226_p9 = pnand %p1084_p7, %p225_p8 }
   0xd   : > { %p260_p10 = scmp.lt.s32.totalorder (!%p226_p9), %s1495_s25, 1  ;;  %s257_s12 = sand.u32 (!%p226_p9), 1, %s1425_s22  }
   0xe   : > { %229 = sbr.rel (%p226_p9) target bundleno = 546 (0x222), region = 44  ;;  %s1085_s17 = sshll.u32 (!%p226_p9), %s257_s12, 5 }
   0xf   : > { %s259_s19 = scalar_lea.vmem (!%p226_p9), [#allocation2], %s1085_s17  ;;  %s1200_s26 = sshll.u32 (!%p226_p9), %s1495_s25, 9 }
  0x10   : > { %s1007_s20 = sshll.u32 (!%p226_p9), %s259_s19, 4  ;;  %s2120_s29 = scalar_lea.hbm (!%p226_p9), %s2170_s6, %s1200_s26  ;;  %s2115_s20 = int_to_ptr.vmem [resolvable:$true] %s1007_s20 }
  0x13   : > { %v316_v0 = vld [vmem:[%s2166_s2 + $0xf8] sm:$0xff]  ;;  %v315_v2 = vld [vmem:[%s2166_s2 + $0xf0] sm:$0xff]  ;;  %v314_v5 = vld [vmem:[%s2166_s2 + $0xe8] sm:$0xff]  ;;  %s1619_s11 = scalar_select %p260_p10, %s1495_s25, 1  ;;  %vm614_vm0 = vcmask 1040384   ;;  %vm626_vm2 = vcmask 1046528  }
  0x14   : > { %v300_v1 = vld [vmem:[%s2166_s2 + $0x78] sm:$0xff]  ;;  %1201 = vmatprep.subr.mxu0 %v316_v0  ;;  %v299_v3 = vld [vmem:[%s2166_s2 + $0x70] sm:$0xff]  ;;  %v298_v8 = vld [vmem:[%s2166_s2 + $0x68] sm:$0xff]  ;;  %vm704_vm4 = vcmask 523264   ;;  %s1373_s25 = scalar_lea.vmem %s2115_s20, 512 }
  0x15   : > { %v1121_v4 = vld [vmem:[%s2166_s2 + $0x1f8] sm:$0xff]  ;;  %1202 = vmatpush3.msra.mxu0 %v300_v1  ;;  %v1120_v7 = vld [vmem:[%s2166_s2 + $0x1f0] sm:$0xff]  ;;  %v313_v10 = vld [vmem:[%s2166_s2 + $0xe0] sm:$0xff]  ;;  %s1198_s14 = sshll.u32 %s1619_s11, 5  ;;  %p1374_p11 = scmp.ne.s32.totalorder %s2115_s20, %s1373_s25 }
  0x16   : > { %1239 = vmatprep.subr.mxu1 %v1121_v4  ;;  %v1105_v6 = vld [vmem:[%s2166_s2 + $0x178] sm:$0xff]  ;;  %1203 = vmatprep.subr.mxu0 %v315_v2  ;;  %v1104_v9 = vld [vmem:[%s2166_s2 + $0x170] sm:$0xff]  ;;  %v1119_v11 = vld [vmem:[%s2166_s2 + $0x1e8] sm:$0xff]  ;;  %s1667_s15 = scalar_lea.vmem %s2164_s0, %s1198_s14  ;;  %s1672_s18 = scalar_lea.vmem %s2165_s1, %s1198_s14 }
  0x17   : > { %1240 = vmatpush3.msra.mxu1 %v1105_v6  ;;  %1204 = vmatpush3.msra.mxu0 %v299_v3  ;;  %v1103_v12 = vld [vmem:[%s2166_s2 + $0x168] sm:$0xff]  ;;  %v297_v13 = vld [vmem:[%s2166_s2 + $0x60] sm:$0xff]  ;;  %v312_v15 = vld [vmem:[%s2166_s2 + $0xd8] sm:$0xff]  ;;  %p1375_p12 = pnand %p1374_p11, %p1512_p5 }
  0x18   : > { %1241 = vmatprep.subr.mxu1 %v1120_v7  ;;  %1205 = vmatprep.subr.mxu0 %v314_v5  ;;  %v1118_v14 = vld [vmem:[%s2166_s2 + $0x1e0] sm:$0xff]  ;;  %v296_v17 = vld [vmem:[%s2166_s2 + $0x58] sm:$0xff]  ;;  %v311_v19 = vld [vmem:[%s2166_s2 + $0xd0] sm:$0xff] }
  0x19   : > { %1242 = vmatpush3.msra.mxu1 %v1104_v9  ;;  %1206 = vmatpush3.msra.mxu0 %v298_v8  ;;  %v1102_v16 = vld [vmem:[%s2166_s2 + $0x160] sm:$0xff]  ;;  %v1117_v18 = vld [vmem:[%s2166_s2 + $0x1d8] sm:$0xff]  ;;  %v295_v21 = vld [vmem:[%s2166_s2 + $0x50] sm:$0xff]  ;;  %p1376_p13 = pneg %p1375_p12 }
  0x1a   : > { %1243 = vmatprep.subr.mxu1 %v1119_v11  ;;  %1207 = vmatprep.subr.mxu0 %v313_v10  ;;  %v1101_v20 = vld [vmem:[%s2166_s2 + $0x158] sm:$0xff]  ;;  %v1116_v22 = vld [vmem:[%s2166_s2 + $0x1d0] sm:$0xff]  ;;  %v310_v23 = vld [vmem:[%s2166_s2 + $0xc8] sm:$0xff] }
  0x1b   : > { %1244 = vmatpush3.msra.mxu1 %v1103_v12  ;;  %1208 = vmatpush3.msra.mxu0 %v297_v13  ;;  %v1100_v24 = vld [vmem:[%s2166_s2 + $0x150] sm:$0xff]  ;;  %v294_v25 = vld [vmem:[%s2166_s2 + $0x48] sm:$0xff]  ;;  %v309_v27 = vld [vmem:[%s2166_s2 + $0xc0] sm:$0xff] }
  0x1c   : > { %1245 = vmatprep.subr.mxu1 %v1118_v14  ;;  %1209 = vmatprep.subr.mxu0 %v312_v15  ;;  %v1115_v26 = vld [vmem:[%s2166_s2 + $0x1c8] sm:$0xff]  ;;  %v293_v29 = vld [vmem:[%s2166_s2 + $0x40] sm:$0xff]  ;;  %v308_v31 = vld [vmem:[%s2166_s2 + $0xb8] sm:$0xff] }
  0x1d   : > { %1246 = vmatpush3.msra.mxu1 %v1102_v16  ;;  %1210 = vmatpush3.msra.mxu0 %v296_v17  ;;  %v1099_v28 = vld [vmem:[%s2166_s2 + $0x148] sm:$0xff]  ;;  %v1114_v30 = vld [vmem:[%s2166_s2 + $0x1c0] sm:$0xff]  ;;  %v292_v33 = vld [vmem:[%s2166_s2 + $0x38] sm:$0xff] }
  0x1e   : > { %1247 = vmatprep.subr.mxu1 %v1117_v18  ;;  %1211 = vmatprep.subr.mxu0 %v311_v19  ;;  %v1098_v32 = vld [vmem:[%s2166_s2 + $0x140] sm:$0xff]  ;;  %v1113_v34 = vld [vmem:[%s2166_s2 + $0x1b8] sm:$0xff]  ;;  %v307_v35 = vld [vmem:[%s2166_s2 + $0xb0] sm:$0xff] }
  0x1f   : > { %1248 = vmatpush3.msra.mxu1 %v1101_v20  ;;  %1212 = vmatpush3.msra.mxu0 %v295_v21  ;;  %v1097_v36 = vld [vmem:[%s2166_s2 + $0x138] sm:$0xff]  ;;  %v291_v37 = vld [vmem:[%s2166_s2 + $0x30] sm:$0xff]  ;;  %v306_v39 = vld [vmem:[%s2166_s2 + $0xa8] sm:$0xff] }
  0x20   : > { %1249 = vmatprep.subr.mxu1 %v1116_v22  ;;  %1213 = vmatprep.subr.mxu0 %v310_v23  ;;  %v1112_v38 = vld [vmem:[%s2166_s2 + $0x1b0] sm:$0xff]  ;;  %v290_v41 = vld [vmem:[%s2166_s2 + $0x28] sm:$0xff]  ;;  %v305_v43 = vld [vmem:[%s2166_s2 + $0xa0] sm:$0xff] }
  0x21   : > { %1250 = vmatpush3.msra.mxu1 %v1100_v24  ;;  %1214 = vmatpush3.msra.mxu0 %v294_v25  ;;  %v1096_v40 = vld [vmem:[%s2166_s2 + $0x130] sm:$0xff]  ;;  %v1111_v42 = vld [vmem:[%s2166_s2 + $0x1a8] sm:$0xff]  ;;  %v289_v45 = vld [vmem:[%s2166_s2 + $0x20] sm:$0xff] }
  0x22   : > { %1251 = vmatprep.subr.mxu1 %v1115_v26  ;;  %1215 = vmatprep.subr.mxu0 %v309_v27  ;;  %v1095_v44 = vld [vmem:[%s2166_s2 + $0x128] sm:$0xff]  ;;  %v1110_v46 = vld [vmem:[%s2166_s2 + $0x1a0] sm:$0xff]  ;;  %v304_v47 = vld [vmem:[%s2166_s2 + $0x98] sm:$0xff] }
  0x23   : > { %1252 = vmatpush3.msra.mxu1 %v1099_v28  ;;  %1216 = vmatpush3.msra.mxu0 %v293_v29  ;;  %v288_v48 = vld [vmem:[%s2166_s2 + $0x18] sm:$0xff]  ;;  %v1094_v49 = vld [vmem:[%s2166_s2 + $0x120] sm:$0xff]  ;;  %v271_v51 = vld [vmem:[%s1672_s18 + $0x8] sm:$0xff] }
  0x24   : > { %1253 = vmatprep.subr.mxu1 %v1114_v30  ;;  %1217 = vmatprep.subr.mxu0 %v308_v31  ;;  %v1109_v50 = vld [vmem:[%s2166_s2 + $0x198] sm:$0xff]  ;;  %v275_v52 = vld [vmem:[%s1667_s15 + $0x8] sm:$0xff]  ;;  %v303_v53 = vld [vmem:[%s2166_s2 + $0x90] sm:$0xff] }
  0x25   : > { %1254 = vmatpush3.msra.mxu1 %v1098_v32  ;;  %1218 = vmatpush3.msra.mxu0 %v292_v33  ;;  %v1093_v54 = vld [vmem:[%s2166_s2 + $0x118] sm:$0xff]  ;;  %v287_v55 = vld [vmem:[%s2166_s2 + $0x10] sm:$0xff]  ;;  %v302_v56 = vld [vmem:[%s2166_s2 + $0x88] sm:$0xff]  ;;  %v279_v59 = vadd.f32 %v275_v52, %v271_v51 }
  0x26   : > { %1255 = vmatprep.subr.mxu1 %v1113_v34  ;;  %1219 = vmatprep.subr.mxu0 %v307_v35  ;;  %v1108_v57 = vld [vmem:[%s2166_s2 + $0x190] sm:$0xff]  ;;  %v270_v60 = vld [vmem:[%s1672_s18] sm:$0xff]  ;;  %v286_v62 = vld [vmem:[%s2166_s2 + $0x8] sm:$0xff] }
  0x27   : > { %1256 = vmatpush3.msra.mxu1 %v1097_v36  ;;  %1220 = vmatpush3.msra.mxu0 %v291_v37  ;;  %v1092_v58 = vld [vmem:[%s2166_s2 + $0x110] sm:$0xff]  ;;  %v274_v61 = vld [vmem:[%s1667_s15] sm:$0xff]  ;;  %v1107_v1 = vld [vmem:[%s2166_s2 + $0x188] sm:$0xff] }
  0x28   : > { %1257 = vmatprep.subr.mxu1 %v1112_v38  ;;  %1221 = vmatprep.subr.mxu0 %v306_v39  ;;  %v301_v63 = vld [vmem:[%s2166_s2 + $0x80] sm:$0xff]  ;;  %v1726_v2 = vadd.f32 %v274_v61, %v270_v60  ;;  %v1091_v3 = vld [vmem:[%s2166_s2 + $0x108] sm:$0xff]  ;;  %v273_v4 = vld [vmem:[%s1672_s18 + $0x18] sm:$0xff] }
  0x29   : > { %1258 = vmatpush3.msra.mxu1 %v1096_v40  ;;  %1222 = vmatpush3.msra.mxu0 %v290_v41  ;;  %v285_v0 = vld [vmem:[%s2166_s2] sm:$0xff]  ;;  %v277_v5 = vld [vmem:[%s1667_s15 + $0x18] sm:$0xff]  ;;  %v272_v9 = vld [vmem:[%s1672_s18 + $0x10] sm:$0xff]  ;;  %s2124_s18 = scalar_lea.sflag [#allocation3], %s257_s12 }
  0x2a   : > { %1259 = vmatprep.subr.mxu1 %v1111_v42  ;;  %1223 = vmatprep.subr.mxu0 %v305_v43  ;;  %v1153_v6 = vld [vmem:[%s2166_s2 + $0x2f8] sm:$0xff]  ;;  %v1106_v7 = vld [vmem:[%s2166_s2 + $0x180] sm:$0xff]  ;;  %v276_v10 = vld [vmem:[%s1667_s15 + $0x10] sm:$0xff]  ;;  %v1747_v12 = vadd.f32 %v277_v5, %v273_v4  ;;  %s1436_s15 = smov [#allocation2]  }
  0x2b   : > { %1260 = vmatpush3.msra.mxu1 %v1095_v44  ;;  %1224 = vmatpush3.msra.mxu0 %v289_v45  ;;  %v1137_v8 = vld [vmem:[%s2166_s2 + $0x278] sm:$0xff]  ;;  %v1090_v11 = vld [vmem:[%s2166_s2 + $0x100] sm:$0xff]  ;;  %v1152_v13 = vld [vmem:[%s2166_s2 + $0x2f0] sm:$0xff]  ;;  %v1756_v15 = vadd.f32 %v276_v10, %v272_v9  ;;  %s1377_s9 = sshll.u32 %s1436_s15, 4  ;;  %s1378_s9 = int_to_ptr.vmem [resolvable:$false] %s1377_s9 }
  0x2c   : > { %1261 = vmatprep.subr.mxu1 %v1110_v46  ;;  %1225 = vmatprep.subr.mxu0 %v304_v47  ;;  %v1136_v14 = vld [vmem:[%s2166_s2 + $0x270] sm:$0xff]  ;;  %v1151_v16 = vld [vmem:[%s2166_s2 + $0x2e8] sm:$0xff]  ;;  %v1150_v18 = vld [vmem:[%s2166_s2 + $0x2e0] sm:$0xff]  ;;  %s1379_s14 = scalar_lea.vmem %s1378_s9, 1024  ;;  %p1380_p0 = scmp.lt.s32.totalorder %s2115_s20, %s1378_s9 }
  0x2d   : > { %1262 = vmatpush3.msra.mxu1 %v1094_v49  ;;  %1226 = vmatpush3.msra.mxu0 %v288_v48  ;;  %v1135_v17 = vld [vmem:[%s2166_s2 + $0x268] sm:$0xff]  ;;  %v1134_v19 = vld [vmem:[%s2166_s2 + $0x260] sm:$0xff]  ;;  %v1149_v20 = vld [vmem:[%s2166_s2 + $0x2d8] sm:$0xff]  ;;  %p1381_p1 = scmp.lt.s32.totalorder %s1379_s14, %s1373_s25 }
  0x2e   : > { %1263 = vmatprep.subr.mxu1 %v1109_v50  ;;  %1227 = vmatprep.subr.mxu0 %v303_v53  ;;  %v1133_v21 = vld [vmem:[%s2166_s2 + $0x258] sm:$0xff]  ;;  %v1148_v22 = vld [vmem:[%s2166_s2 + $0x2d0] sm:$0xff]  ;;  %v1147_v24 = vld [vmem:[%s2166_s2 + $0x2c8] sm:$0xff] }
  0x2f   : > { %1264 = vmatpush3.msra.mxu1 %v1093_v54  ;;  %1228 = vmatpush3.msra.mxu0 %v287_v55  ;;  %v1132_v23 = vld [vmem:[%s2166_s2 + $0x250] sm:$0xff]  ;;  %v1131_v25 = vld [vmem:[%s2166_s2 + $0x248] sm:$0xff]  ;;  %v1146_v26 = vld [vmem:[%s2166_s2 + $0x2c0] sm:$0xff]  ;;  %p1382_p2 = por %p1381_p1, %p1380_p0 }
  0x30   : > { %1265 = vmatprep.subr.mxu1 %v1108_v57  ;;  %1229 = vmatprep.subr.mxu0 %v302_v56  ;;  %v1130_v27 = vld [vmem:[%s2166_s2 + $0x240] sm:$0xff]  ;;  %v1145_v28 = vld [vmem:[%s2166_s2 + $0x2b8] sm:$0xff]  ;;  %v1144_v30 = vld [vmem:[%s2166_s2 + $0x2b0] sm:$0xff] }
  0x31   : > { %1266 = vmatpush3.msra.mxu1 %v1092_v58  ;;  %1230 = vmatpush3.msra.mxu0 %v286_v62  ;;  %v1129_v29 = vld [vmem:[%s2166_s2 + $0x238] sm:$0xff]  ;;  %v1128_v31 = vld [vmem:[%s2166_s2 + $0x230] sm:$0xff]  ;;  %v1143_v32 = vld [vmem:[%s2166_s2 + $0x2a8] sm:$0xff]  ;;  %p1383_p3 = pnand %p1382_p2, %p1376_p13 }
  0x32   : > { %381 = vmatprep.mubr.f32.mxu0 %v279_v59  ;;  %1231 = vmatprep.subr.mxu0 %v301_v63  ;;  %v1127_v33 = vld [vmem:[%s2166_s2 + $0x228] sm:$0xff]  ;;  %v1142_v34 = vld [vmem:[%s2166_s2 + $0x2a0] sm:$0xff]  ;;  %v1141_v36 = vld [vmem:[%s2166_s2 + $0x298] sm:$0xff] }
  0x33   : > { %1267 = vmatprep.subr.mxu1 %v1107_v1  ;;  %1232 = vmatpush3.msra.mxu0 %v285_v0  ;;  %v1126_v35 = vld [vmem:[%s2166_s2 + $0x220] sm:$0xff]  ;;  %v1125_v37 = vld [vmem:[%s2166_s2 + $0x218] sm:$0xff]  ;;  %v1140_v38 = vld [vmem:[%s2166_s2 + $0x290] sm:$0xff] }
  0x34   : > { %1268 = vmatpush3.msra.mxu1 %v1091_v3  ;;  %382 = vmatmul.mubr.f32.vlgmr.msra.gmra.mxu0 %v1726_v2  ;;  %v1124_v39 = vld [vmem:[%s2166_s2 + $0x210] sm:$0xff]  ;;  %v1139_v40 = vld [vmem:[%s2166_s2 + $0x288] sm:$0xff]  ;;  %v1138_v42 = vld [vmem:[%s2166_s2 + $0x280] sm:$0xff] }
  0x35   : > { %1277 = vmatprep.subr.mxu0 %v1153_v6  ;;  %1269 = vmatprep.subr.mxu1 %v1106_v7  ;;  %v1123_v41 = vld [vmem:[%s2166_s2 + $0x208] sm:$0xff]  ;;  %v1122_v43 = vld [vmem:[%s2166_s2 + $0x200] sm:$0xff]  ;;  %v703_v44 = vld [vmem:[%s2168_s4 + $0x78] sm:$0xff] }
  0x36   : > { %1278 = vmatpush3.msra.mxu0 %v1137_v8  ;;  %1270 = vmatpush3.msra.mxu1 %v1090_v11  ;;  %v1856_v45 = vld [vmem:[%s2168_s4 + $0x178] sm:$0xff]  ;;  %v702_v46 = vld [vmem:[%s2168_s4 + $0x70] sm:$0xff]  ;;  %v701_v48 = vld [vmem:[%s2168_s4 + $0x68] sm:$0xff] }
  0x37   : > { %489 = vmatprep.mubr.f32.mxu1 %v279_v59  ;;  %1279 = vmatprep.subr.mxu0 %v1152_v13  ;;  %v1865_v47 = vld [vmem:[%s2168_s4 + $0x170] sm:$0xff]  ;;  %v1874_v49 = vld [vmem:[%s2168_s4 + $0x168] sm:$0xff]  ;;  %v700_v50 = vld [vmem:[%s2168_s4 + $0x60] sm:$0xff]  ;;  %v1435_v13 = vmov 0.0  }
  0x38   : > { %386 = vmatprep.mubr.f32.mxu0 %v1747_v12  ;;  %490 = vmatmul.mubr.f32.vlgmr.msra.gmra.mxu1 %v1726_v2  ;;  %v1883_v51 = vld [vmem:[%s2168_s4 + $0x160] sm:$0xff]  ;;  %v699_v52 = vld [vmem:[%s2168_s4 + $0x58] sm:$0xff]  ;;  %v698_v54 = vld [vmem:[%s2168_s4 + $0x50] sm:$0xff] }
  0x39   : > { %1280 = vmatpush3.msra.mxu0 %v1136_v14  ;;  %494 = vmatprep.mubr.f32.mxu1 %v1747_v12  ;;  %v1892_v53 = vld [vmem:[%s2168_s4 + $0x158] sm:$0xff]  ;;  %v1901_v55 = vld [vmem:[%s2168_s4 + $0x150] sm:$0xff]  ;;  %v697_v56 = vld [vmem:[%s2168_s4 + $0x48] sm:$0xff] }
  0x3a   : > { %387 = vmatmul.mubr.f32.gmra.mxu0 %v1756_v15  ;;  %1281 = vmatprep.subr.mxu0 %v1151_v16  ;;  %v1910_v57 = vld [vmem:[%s2168_s4 + $0x148] sm:$0xff]  ;;  %v696_v58 = vld [vmem:[%s2168_s4 + $0x40] sm:$0xff]  ;;  %v695_v60 = vld [vmem:[%s2168_s4 + $0x38] sm:$0xff] }
  0x3b   : > { %1282 = vmatpush3.msra.mxu0 %v1135_v17  ;;  %597 = vmatprep.mubr.f32.mxu0 %v279_v59  ;;  %v1919_v59 = vld [vmem:[%s2168_s4 + $0x140] sm:$0xff]  ;;  %v1928_v61 = vld [vmem:[%s2168_s4 + $0x138] sm:$0xff]  ;;  %v694_v62 = vld [vmem:[%s2168_s4 + $0x30] sm:$0xff] }
  0x3c   : > { %1283 = vmatprep.subr.mxu0 %v1150_v18  ;;  %495 = vmatmul.mubr.f32.gmra.mxu1 %v1756_v15  ;;  %v1937_v63 = vld [vmem:[%s2168_s4 + $0x130] sm:$0xff]  ;;  %v693_v0 = vld [vmem:[%s2168_s4 + $0x28] sm:$0xff]  ;;  %v1955_v3 = vld [vmem:[%s2168_s4 + $0x120] sm:$0xff] }
  0x3d   : > { %1284 = vmatpush3.msra.mxu0 %v1134_v19  ;;  %727 = vmatprep.subr.mxu1 %v703_v44  ;;  %v1946_v1 = vld [vmem:[%s2168_s4 + $0x128] sm:$0xff]  ;;  %v691_v4 = vld [vmem:[%s2168_s4 + $0x18] sm:$0xff]  ;;  %v690_v6 = vld [vmem:[%s2168_s4 + $0x10] sm:$0xff] }
  0x3e   : > { %1285 = vmatprep.subr.mxu0 %v1149_v20  ;;  %728 = vmatpush1.msra.mxu1 %v702_v46  ;;  %v1964_v5 = vld [vmem:[%s2168_s4 + $0x118] sm:$0xff]  ;;  %v1973_v7 = vld [vmem:[%s2168_s4 + $0x110] sm:$0xff]  ;;  %v689_v8 = vld [vmem:[%s2168_s4 + $0x8] sm:$0xff]  ;;  %v282_v20 = vlaneseq }
  0x3f   : > { %1286 = vmatpush3.msra.mxu0 %v1133_v21  ;;  %729 = vmatprep.subr.mxu1 %v701_v48  ;;  %v1982_v9 = vld [vmem:[%s2168_s4 + $0x108] sm:$0xff]  ;;  %v688_v10 = vld [vmem:[%s2168_s4] sm:$0xff] }
  0x40   : > { %1287 = vmatprep.subr.mxu0 %v1148_v22  ;;  %730 = vmatpush1.msra.mxu1 %v700_v50  ;;  %v1990_v11 = vld [vmem:[%s2168_s4 + $0x100] sm:$0xff] }
  0x41   : > { %1288 = vmatpush3.msra.mxu0 %v1132_v23  ;;  %731 = vmatprep.subr.mxu1 %v699_v52  ;;  %v1999_v23 = vshrl.u32 %v282_v20, 7  ;;  %v1154_v48 = vld [vmem:[%s2167_s3] ss:$0 sm:$0xff]  ;;  %v1164_v20 = vld [vmem:[%s2168_s4 + $0xc8] sm:$0xff] }
  0x42   : > { %1289 = vmatprep.subr.mxu0 %v1147_v24  ;;  %732 = vmatpush1.msra.mxu1 %v698_v54 }
  0x43   : > { %1290 = vmatpush3.msra.mxu0 %v1131_v25  ;;  %733 = vmatprep.subr.mxu1 %v697_v56  ;;  %vm608_vm1 = vcmp.gt.s32.totalorder %v1999_v23, 0 }
  0x44   : > { %1291 = vmatprep.subr.mxu0 %v1146_v26  ;;  %734 = vmatpush1.msra.mxu1 %v696_v58 }
  0x45   : > { %1292 = vmatpush3.msra.mxu0 %v1130_v27  ;;  %735 = vmatprep.subr.mxu1 %v695_v60 }
  0x46   : > { %1293 = vmatprep.subr.mxu0 %v1145_v28  ;;  %736 = vmatpush1.msra.mxu1 %v694_v62 }
  0x47   : > { %1294 = vmatpush3.msra.mxu0 %v1129_v29  ;;  %737 = vmatprep.subr.mxu1 %v693_v0 }
  0x48   : > { %1295 = vmatprep.subr.mxu0 %v1144_v30  ;;  %775 = vmatprep.mubr.f32.mxu1 %v1435_v13 }
  0x49   : > { %1296 = vmatpush3.msra.mxu0 %v1128_v31 }
  0x4a   : > { %1297 = vmatprep.subr.mxu0 %v1143_v32 }
  0x4b   : > { %1298 = vmatpush3.msra.mxu0 %v1127_v33  ;;  %v2004_v33 = vadd.s32 8, %v1999_v23 }
  0x4c   : > { %1299 = vmatprep.subr.mxu0 %v1142_v34 }
  0x4d   : > { %1300 = vmatpush3.msra.mxu0 %v1126_v35  ;;  %vm623_vm3 = vcmp.lt.s32.totalorder %v2004_v33, 15 }
  0x4e   : > { %1301 = vmatprep.subr.mxu0 %v1141_v36 }
  0x4f   : > { %1302 = vmatpush3.msra.mxu0 %v1125_v37 }
  0x50   : > { %1303 = vmatprep.subr.mxu0 %v1140_v38 }
  0x51   : > { %1304 = vmatpush3.msra.mxu0 %v1124_v39 }
  0x52   : > { %1305 = vmatprep.subr.mxu0 %v1139_v40 }
  0x53   : > { %1306 = vmatpush3.msra.mxu0 %v1123_v41 }
  0x54   : > { %1307 = vmatprep.subr.mxu0 %v1138_v42 }
  0x55   : > { %1308 = vmatpush3.msra.mxu0 %v1122_v43 }
  0x56   : > { %598 = vmatmul.mubr.f32.vlgmr.msra.gmra.mxu0 %v1726_v2  ;;  %908 = vmatprep.subr.mxu0 %v1856_v45  ;;  %v692_v2 = vld [vmem:[%s2168_s4 + $0x20] sm:$0xff] }
  0x57   : > { %602 = vmatprep.mubr.f32.mxu0 %v1747_v12  ;;  %909 = vmatpush1.msra.mxu0 %v1865_v47  ;;  %v1170_v12 = vld [vmem:[%s2168_s4 + $0xf8] sm:$0xff] }
  0x58   : > { %910 = vmatprep.subr.mxu0 %v1874_v49  ;;  %738 = vmatpush1.msra.mxu1 %v692_v2 }
  0x59   : > { %911 = vmatpush1.msra.mxu0 %v1883_v51  ;;  %739 = vmatprep.subr.mxu1 %v691_v4 }
  0x5a   : > { %603 = vmatmul.mubr.f32.gmra.mxu0 %v1756_v15  ;;  %912 = vmatprep.subr.mxu0 %v1892_v53 }
  0x5b   : > { %913 = vmatpush1.msra.mxu0 %v1901_v55  ;;  %740 = vmatpush1.msra.mxu1 %v690_v6 }
  0x5c   : > { %914 = vmatprep.subr.mxu0 %v1910_v57  ;;  %741 = vmatprep.subr.mxu1 %v689_v8 }
  0x5d   : > { %915 = vmatpush1.msra.mxu0 %v1919_v59  ;;  %742 = vmatpush1.msra.mxu1 %v688_v10 }
  0x5e   : > { %916 = vmatprep.subr.mxu0 %v1928_v61  ;;  %956 = vmatprep.mubr.f32.mxu0 %v1435_v13 }
  0x5f   : > { %917 = vmatpush1.msra.mxu0 %v1937_v63  ;;  %808 = vmatprep.subr.mxu1 %v1170_v12  ;;  %v1169_v12 = vld [vmem:[%s2168_s4 + $0xf0] sm:$0xff] }
  0x60   : > { %918 = vmatprep.subr.mxu0 %v1946_v1 }
  0x61   : > { %919 = vmatpush1.msra.mxu0 %v1955_v3 }
  0x62   : > { %920 = vmatprep.subr.mxu0 %v1964_v5 }
  0x63   : > { %921 = vmatpush1.msra.mxu0 %v1973_v7 }
  0x64   : > { %922 = vmatprep.subr.mxu0 %v1982_v9 }
  0x65   : > { %923 = vmatpush1.msra.mxu0 %v1990_v11 }
  0xf4   : > { %v1233_v14 = vpop.f32.mrf.mxu0 }
  0xf6   : > { %v1234_v15 = vpop.f32.mrf.mxu0 }
  0xf7   : > { %v1235_v22 = vadd.f32 %v1234_v15, %v1233_v14  ;;  %v1168_v15 = vld [vmem:[%s2168_s4 + $0xe8] sm:$0xff] }
  0xf8   : > { %v1271_v17 = vpop.f32.mrf.mxu1 }
  0xf9   : > { %v615_v27 = vrot.slane %v1235_v22, 7  ;;  %v1162_v22 = vld [vmem:[%s2168_s4 + $0xb8] sm:$0xff] }
  0xfa   : > { %v1236_v16 = vpop.f32.mrf.mxu0  ;;  %v1272_v19 = vpop.f32.mrf.mxu1 }
  0xfb   : > { %v1273_v34 = vadd.f32 %v1272_v19, %v1271_v17  ;;  %v1166_v17 = vld [vmem:[%s2168_s4 + $0xd8] sm:$0xff] }
  0xfc   : > { %v1237_v18 = vpop.f32.mrf.mxu0  ;;  %v1274_v25 = vpop.f32.mrf.mxu1 }
  0xfd   : > { %v1238_v21 = vadd.f32 %v1237_v18, %v1236_v16  ;;  %v1167_v16 = vld [vmem:[%s2168_s4 + $0xe0] sm:$0xff]  ;;  %v1165_v18 = vld [vmem:[%s2168_s4 + $0xd0] sm:$0xff] }
  0xfe   : > { %v1275_v30 = vpop.f32.mrf.mxu1 }
  0xff   : > { %v611_v24 = vrot.slane %v1238_v21, 7  ;;  %v1276_v37 = vadd.f32 %v1275_v30, %v1274_v25  ;;  %v1163_v21 = vld [vmem:[%s2168_s4 + $0xc0] sm:$0xff]  ;;  %v1160_v25 = vld [vmem:[%s2168_s4 + $0xa8] sm:$0xff] }
 0x100   : > { %v1155_v30 = vld [vmem:[%s2168_s4 + $0x80] sm:$0xff] }
 0x101   : > { %v619_v29 = vsel %vm614_vm0, %v611_v24, %v615_v27  ;;  %v616_v39 = vsel %vm614_vm0, %v615_v27, %v611_v24  ;;  %v1161_v24 = vld [vmem:[%s2168_s4 + $0xb0] sm:$0xff]  ;;  %v1158_v27 = vld [vmem:[%s2168_s4 + $0x98] sm:$0xff] }
 0x102   : > { %v620_v36 = vsel %vm608_vm1, %v619_v29, 0.0  ;;  %v637_v43 = vadd.f32 %v1276_v37, %v616_v39  ;;  %v1156_v29 = vld [vmem:[%s2168_s4 + $0x88] sm:$0xff] }
 0x103   : > { %v636_v42 = vadd.f32 %v1273_v34, %v620_v36 }
 0x116   : > { %v1309_v26 = vpop.f32.mrf.mxu0 }
 0x118   : > { %v1310_v28 = vpop.f32.mrf.mxu0 }
 0x119   : > { %v1311_v32 = vadd.f32 %v1310_v28, %v1309_v26  ;;  %v1159_v26 = vld [vmem:[%s2168_s4 + $0xa0] sm:$0xff]  ;;  %v1157_v28 = vld [vmem:[%s2168_s4 + $0x90] sm:$0xff] }
 0x11a   : > { %v1312_v31 = vpop.f32.mrf.mxu0 }
 0x11b   : > { %v627_v40 = vrot.slane %v1311_v32, 1 }
 0x11c   : > { %v1313_v35 = vpop.f32.mrf.mxu0 }
 0x11d   : > { %v1314_v38 = vadd.f32 %v1313_v35, %v1312_v31 }
 0x11f   : > { %v628_v41 = vrot.slane %v1314_v38, 1 }
 0x121   : > { %v629_v44 = vsel %vm626_vm2, %v627_v40, %v628_v41  ;;  %v633_v46 = vsel %vm626_vm2, %v628_v41, %v627_v40 }
 0x122   : > { %v635_v50 = vsel %vm623_vm3, %v633_v46, 0.0  ;;  %v638_v52 = vadd.f32 %v636_v42, %v629_v44 }
 0x123   : > { %v639_v54 = vadd.f32 %v637_v43, %v635_v50 }
 0x124   : > { %v647_v56 = vadd.f32 %v1154_v48, %v638_v52 }
 0x125   : > { %v648_v58 = vadd.f32 %v1154_v48, %v639_v54 }
 0x126   : > { %v2017_v60 = vmax.f32 %v647_v56, 0.0 }
 0x127   : > { %v2019_v62 = vmax.f32 %v648_v58, 0.0 }
 0x128   : > { %v655_v0 = vrot.slane %v2017_v60, 7  ;;  %v662_v2 = vrot.slane %v2017_v60, 1 }
 0x129   : > { %v663_v4 = vrot.slane %v2019_v62, 1  ;;  %v652_v6 = vrot.slane %v2019_v62, 7 }
 0x12b   : > { %v664_v8 = vsel %vm626_vm2, %v662_v2, %v663_v4  ;;  %v659_v10 = vsel %vm614_vm0, %v652_v6, %v655_v0  ;;  %v656_v19 = vsel %vm614_vm0, %v655_v0, %v652_v6 }
 0x12c   : > { %1191 = vmatmul.mubr.msk.f32.vlgmr.msra.gmra.mxu0 %vm704_vm4, %v664_v8  ;;  %v660_v14 = vsel %vm608_vm1, %v659_v10, 0.0 }
 0x12d   : > { %1171 = vmatmul.mubr.msk.f32.vlgmr.msra.gmra.mxu1 %vm704_vm4, %v660_v14 }
 0x12e   : > { %809 = vmatpush1.msra.mxu1 %v1169_v12  ;;  %781 = vmatprep.mubr.f32.mxu1 %v1435_v13 }
 0x12f   : > { %810 = vmatprep.subr.mxu1 %v1168_v15 }
 0x130   : > { %811 = vmatpush1.msra.mxu1 %v1167_v16 }
 0x131   : > { %812 = vmatprep.subr.mxu1 %v1166_v17  ;;  %1172 = vmatmul.mubr.msk.f32.gmra.mxu1 %vm704_vm4, %v656_v19 }
 0x132   : > { %813 = vmatpush1.msra.mxu1 %v1165_v18  ;;  %856 = vmatprep.mubr.f32.mxu1 %v1435_v13 }
 0x133   : > { %814 = vmatprep.subr.mxu1 %v1164_v20 }
 0x134   : > { %815 = vmatpush1.msra.mxu1 %v1163_v21 }
 0x135   : > { %816 = vmatprep.subr.mxu1 %v1162_v22 }
 0x136   : > { %817 = vmatpush1.msra.mxu1 %v1161_v24 }
 0x137   : > { %818 = vmatprep.subr.mxu1 %v1160_v25 }
 0x138   : > { %819 = vmatpush1.msra.mxu1 %v1159_v26 }
 0x139   : > { %820 = vmatprep.subr.mxu1 %v1158_v27 }
 0x13a   : > { %821 = vmatpush1.msra.mxu1 %v1157_v28 }
 0x13b   : > { %822 = vmatprep.subr.mxu1 %v1156_v29 }
 0x13c   : > { %823 = vmatpush1.msra.mxu1 %v1155_v30 }
 0x13d   : > { %1173 = vmatmul.mubr.msk.f32.vlgmr.msra.gmra.mxu1 %vm704_vm4, %v2017_v60  ;;  %1315 = vmatprep.subr.mxu1 %v1856_v45  ;;  %v668_v45 = vsel %vm626_vm2, %v663_v4, %v662_v2 }
 0x13e   : > { %1323 = vmatpush1.msra.mxu1 %v1865_v47  ;;  %862 = vmatprep.mubr.f32.mxu1 %v1435_v13  ;;  %v670_v47 = vsel %vm623_vm3, %v668_v45, 0.0 }
 0x13f   : > { %1316 = vmatprep.subr.mxu1 %v1874_v49 }
 0x140   : > { %1324 = vmatpush1.msra.mxu1 %v1883_v51 }
 0x141   : > { %1174 = vmatmul.mubr.msk.f32.gmra.mxu1 %vm704_vm4, %v2019_v62  ;;  %1317 = vmatprep.subr.mxu1 %v1892_v53 }
 0x142   : > { %1325 = vmatpush1.msra.mxu1 %v1901_v55  ;;  %962 = vmatprep.mubr.f32.mxu1 %v1435_v13  ;;  %v977_v55 = vsub.s32 0, %v1999_v23 }
 0x143   : > { %1318 = vmatprep.subr.mxu1 %v1910_v57 }
 0x144   : > { %1326 = vmatpush1.msra.mxu1 %v1919_v59  ;;  %v973_v59 = vld [vmem:[%s2169_s5] sm:$0x3] }
 0x145   : > { %1319 = vmatprep.subr.mxu1 %v1928_v61  ;;  %v981_v61 = vsub.s32 1, %v1999_v23 }
 0x146   : > { %1327 = vmatpush1.msra.mxu1 %v1937_v63 }
 0x147   : > { %1320 = vmatprep.subr.mxu1 %v1946_v1  ;;  %v982_v13 = vrot.slane %v973_v59, %v981_v61 }
 0x148   : > { %1328 = vmatpush1.msra.mxu1 %v1955_v3 }
 0x149   : > { %1321 = vmatprep.subr.mxu1 %v1964_v5  ;;  %v978_v5 = vrot.slane %v973_v59, %v977_v55 }
 0x14a   : > { %1329 = vmatpush1.msra.mxu1 %v1973_v7 }
 0x14b   : > { %1322 = vmatprep.subr.mxu1 %v1982_v9 }
 0x14c   : > { %1330 = vmatpush1.msra.mxu1 %v1990_v11 }
 0x14d   : > { %1192 = vmatmul.mubr.msk.f32.vlgmr.msra.gmra.mxu1 %vm704_vm4, %v670_v47 }
 0x1ec   : > { %v958_v63 = vpop.f32.mrf.mxu0 }
 0x1ed   : > { %v777_v49 = vpop.f32.mrf.mxu1 }
 0x1ee   : > { %v960_v31 = vpop.f32.mrf.mxu0 }
 0x1ef   : > { %v779_v51 = vpop.f32.mrf.mxu1 }
 0x1f1   : > { %v783_v53 = vpop.f32.mrf.mxu1 }
 0x1f3   : > { %v785_v57 = vpop.f32.mrf.mxu1 }
 0x1fd   : > { %v858_v1 = vpop.f32.mrf.mxu1 }
 0x1fe   : > { %v859_v3 = vadd.f32 %v858_v1, %v777_v49 }
 0x1ff   : > { %v860_v7 = vpop.f32.mrf.mxu1 }
 0x200   : > { %v969_v9 = vadd.f32 %v958_v63, %v859_v3  ;;  %v861_v11 = vadd.f32 %v860_v7, %v779_v51 }
 0x201   : > { %v864_v35 = vpop.f32.mrf.mxu1 }
 0x202   : > { %v985_v32 = vadd.f32 %v978_v5, %v969_v9  ;;  %v970_v33 = vadd.f32 %v960_v31, %v861_v11  ;;  %v865_v36 = vadd.f32 %v864_v35, %v783_v53 }
 0x203   : > { %v866_v23 = vpop.f32.mrf.mxu1 }
 0x204   : > { %989 = vst [vmem:[%s259_s19] sm:$0xff] %v985_v32  ;;  %v986_v34 = vadd.f32 %v982_v13, %v970_v33  ;;  %v867_v38 = vadd.f32 %v866_v23, %v785_v57 }
 0x206   : > { %990 = vst [vmem:[%s259_s19 + $0x8] sm:$0xff] %v986_v34 }
 0x20d   : > { %v964_v37 = vpop.f32.mrf.mxu1 }
 0x20e   : > { %v971_v39 = vadd.f32 %v964_v37, %v865_v36 }
 0x20f   : > { %v966_v40 = vpop.f32.mrf.mxu1 }
 0x210   : > { %v987_v41 = vadd.f32 %v978_v5, %v971_v39  ;;  %v972_v42 = vadd.f32 %v966_v40, %v867_v38 }
 0x212   : > { %991 = vst [vmem:[%s259_s19 + $0x10] sm:$0xff] %v987_v41  ;;  %v988_v43 = vadd.f32 %v982_v13, %v972_v42 }
 0x214   : > { %992 = vst [vmem:[%s259_s19 + $0x18] sm:$0xff] %v988_v43 }
 0x215   : > { %1386 = shalt.err (!%p1383_p3)
}
 0x216   : > { %s1387_s10 = scalar_lea.hbm %s2120_s29, 512  ;;  %s1391_s16 = scalar_lea.hbm %s2170_s6, 1024 }
 0x217   : > { %p1388_p4 = scmp.ne.s32.totalorder %s2120_s29, %s1387_s10  ;;  %p1392_p9 = scmp.lt.s32.totalorder %s2120_s29, %s2170_s6 }
 0x218   : > { %p1393_p10 = scmp.lt.s32.totalorder %s1391_s16, %s1387_s10 }
 0x219   : > { %p1389_p7 = pnand %p1388_p4, %p1512_p5 }
 0x21a   : > { %p1394_p11 = por %p1393_p10, %p1392_p9 }
 0x21b   : > { %p1390_p8 = pneg %p1389_p7 }
 0x21d   : > { %p1395_p12 = pnand %p1394_p11, %p1390_p8 }
 0x21f   : > { %1398 = shalt.err (!%p1395_p12)
}
 0x220   : > { %s1437_s26 = smov 256   ;;  %s1438_s28 = smov 16  }
 0x221   : > { %1331 = dma.vmem_to_hbm [thread:$0]  (%p1512_p5), %s2115_s20, 512, %s2120_s29, %s2124_s18, %s1437_s26, %s1437_s26, %s1438_s28  }
 0x222 PF: > { %p1337_p13 = scmp.ge.s32.totalorder %s1433_s24, 2  ;;  %s1022_s11 = sand.u32 1, %s1421_s21  }
 0x223   : > { %s1023_s25 = scalar_lea.sflag [#allocation3], %s1022_s11 }
 0x224   : > { %p1334_p0 = pnand %p1337_p13, %p1516_p6 }
 0x226   : > { %p1335_p1 = pneg %p1334_p0 }
 0x228   : > { %1416 = dma.done.wait (%p1335_p1), %s1023_s25, 512  }
 0x229   : > { %1418 = vsyncadd (%p1335_p1), %s1023_s25, 4294966784  ;;  %p16_p2 = scmp.ge.s32.totalorder %s1499_s27, 4   ;;  %s2173_s21 = smov %s1425_s22 }
 0x22a   : > { %s2174_s22 = smov %s1429_s23  ;;  %s2175_s23 = smov %s1510_s30 }
 0x22b   : > { %s2176_s24 = smov %s1499_s27  ;;  %18 = sbr.rel (!%p16_p2) target bundleno = 3 (0x3), region = 86 }
 0x230   :  { %1028 = vsyncpa [#allocation3], 1 }
 0x231   :  { %1030 = vsyncpa [#allocation3 + $0x1], 1 }

</bundles_post_ra>
